<compile_context>
chip_gen: v7x
topology: tpu7x:2x2x1
jax: 0.10.0
libtpu: 0.0.40
codegen_flags: <defaults>
</compile_context>

<pallas_src>
import jax
import jax.numpy as jnp
from jax import lax
from jax.experimental import pallas as pl
from jax.experimental.pallas import tpu as pltpu

TEXT_DIM = 64      # text_embedding_dim
GRAPH_HID = 64     # graph_hidden_dim
STATE_HID = 128    # state_hidden_dim
NODE_TYPES = 74    # node_types
CONN_DIM = 100     # connection_predictor output
LN_EPS = 1e-5      # torch.nn.LayerNorm default eps


# ---------------------------------------------------------------------------
# Parameter packing (one-time, wrapper-side)
# ---------------------------------------------------------------------------
def _fuse_gru_layer_params(w_ih, w_hh, b_ih, b_hh):
    """Build fused weight (in_dim+H, 4H) and bias (1, 4H) for one GRU layer.

    Column layout of the fused output g = [x|h] @ W + b:
      [0, 2H)  : gi_r+gh_r | gi_z+gh_z   (r/z gates can be pre-summed)
      [2H, 3H) : gi_n  (x contribution only)
      [3H, 4H) : gh_n  (h contribution only)  -> needed separately for r*gh_n
    """
    H = STATE_HID
    in_dim = w_ih.shape[0]
    W = jnp.zeros((in_dim + H, 4 * H), jnp.float32)
    W = W.at[:in_dim, 0:2 * H].set(w_ih[:, 0:2 * H])
    W = W.at[:in_dim, 2 * H:3 * H].set(w_ih[:, 2 * H:3 * H])
    W = W.at[in_dim:, 0:2 * H].set(w_hh[:, 0:2 * H])
    W = W.at[in_dim:, 3 * H:4 * H].set(w_hh[:, 2 * H:3 * H])
    b = jnp.concatenate([b_ih[:, 0:2 * H] + b_hh[:, 0:2 * H],
                         b_ih[:, 2 * H:3 * H],
                         b_hh[:, 2 * H:3 * H]], axis=1)          # (1, 4H)
    return W, b


def pack_params(params):
    H = STATE_HID
    W0, b0 = _fuse_gru_layer_params(params["w_ih0"], params["w_hh0"],
                                    params["b_ih0"], params["b_hh0"])
    W1, b1 = _fuse_gru_layer_params(params["w_ih1"], params["w_hh1"],
                                    params["b_ih1"], params["b_hh1"])
    gru_w = jnp.stack([W0, W1]).astype(jnp.bfloat16)             # (2, 256, 512)

    # Merged bf16 slab: lanes [0,128) node-type head, [128,256) connection
    # head, [256,320) graph-encoder weight (rows 0:74 valid, rest zero).
    big_w = jnp.zeros((H, 2 * H + GRAPH_HID), jnp.float32)       # (128, 320)
    big_w = big_w.at[:, 0:NODE_TYPES].set(params["w_nt"])
    big_w = big_w.at[:, H:H + CONN_DIM].set(params["w_cp"])
    big_w = big_w.at[0:NODE_TYPES, 2 * H:2 * H + GRAPH_HID].set(params["w_ge"])

    head_b = jnp.zeros((2 * H,), jnp.float32)
    head_b = head_b.at[0:NODE_TYPES].set(params["b_nt"][0])
    head_b = head_b.at[H:H + CONN_DIM].set(params["b_cp"][0])

    # Small fp32 slab: one DMA carries all biases / LayerNorm params.
    small = jnp.zeros((6, 4 * H), jnp.float32)                   # (6, 512)
    small = small.at[0, 0:GRAPH_HID].set(params["b_ge"][0])      # graph-enc bias
    small = small.at[1, 0:GRAPH_HID].set(params["ln_g"][0])      # LN gamma
    small = small.at[2, 0:GRAPH_HID].set(params["ln_b"][0])      # LN beta
    small = small.at[3, :].set(b0[0])                            # GRU l0 fused bias
    small = small.at[4, :].set(b1[0])                            # GRU l1 fused bias
    small = small.at[5, 0:2 * H].set(head_b)                     # fused head bias

    return {
        "small": small,                                          # (6, 512)    fp32
        "big_w": big_w.astype(jnp.bfloat16),                     # (128, 320)  bf16
        "gru_w": gru_w,                                          # (2,256,512) bf16
    }


# ---------------------------------------------------------------------------
# Kernel
# ---------------------------------------------------------------------------
def _fused_gru_cell(xh_bf16, h, w_bf16, b):
    """One fused-matmul GRU step. xh_bf16: (B, 2H) bf16, h: (B, H) fp32."""
    H = STATE_HID
    g = jnp.dot(xh_bf16, w_bf16, preferred_element_type=jnp.float32) + b  # (B, 4H)
    rz = jax.nn.sigmoid(g[:, 0:2 * H])          # one EUP pass for r and z
    r = rz[:, 0:H]
    z = rz[:, H:2 * H]
    n = jnp.tanh(g[:, 2 * H:3 * H] + r * g[:, 3 * H:4 * H])
    return (1.0 - z) * n + z * h


def decoder_kernel(text_ref, graph_ref, h_ref, small_ref, bigw_ref, gruw_ref,
                   head_ref, hnew_ref, xh_ref):
    B = text_ref.shape[0]
    H = STATE_HID

    # --- mean pooling over graph nodes + graph encoder at M=1 ------------------
    g_mean = jnp.mean(graph_ref[...], axis=0, keepdims=True)             # (1, 74)
    w_ge = bigw_ref[0:NODE_TYPES, 2 * H:2 * H + GRAPH_HID]               # (74, 64)
    ge = jnp.dot(g_mean.astype(jnp.bfloat16), w_ge,
                 preferred_element_type=jnp.float32)                     # (1, 64)
    ge = jnp.maximum(ge + small_ref[0:1, 0:GRAPH_HID], 0.0)
    mu = jnp.mean(ge, axis=-1, keepdims=True)
    var = jnp.mean((ge - mu) ** 2, axis=-1, keepdims=True)
    ge = (ge - mu) * lax.rsqrt(var + LN_EPS)
    ge = ge * small_ref[1:2, 0:GRAPH_HID] + small_ref[2:3, 0:GRAPH_HID]

    # --- lane-aligned assembly of both GRU operands in a bf16 scratch ----------
    # row 0: [text | graph_encoded | h0]      row 1: [h0_new | h1]
    xh_ref[0, :, 0:TEXT_DIM] = text_ref[...].astype(jnp.bfloat16)
    xh_ref[0, :, TEXT_DIM:TEXT_DIM + GRAPH_HID] = jnp.broadcast_to(
        ge.astype(jnp.bfloat16), (B, GRAPH_HID))
    xh_ref[0, :, H:2 * H] = h_ref[0].astype(jnp.bfloat16)
    # Pre-stage layer-1's hidden half now (its own row -> no WAR hazard with
    # layer 0's operand load).
    xh_ref[1, :, H:2 * H] = h_ref[1].astype(jnp.bfloat16)

    # --- GRU layer 0 ------------------------------------------------------------
    h0n = _fused_gru_cell(xh_ref[0], h_ref[0], gruw_ref[0], small_ref[3:4, :])

    # TODO(synk): inter-layer dropout (p=0.1) is identity in eval/inference mode.
    # --- GRU layer 1 ------------------------------------------------------------
    xh_ref[1, :, 0:H] = h0n.astype(jnp.bfloat16)
    h1n = _fused_gru_cell(xh_ref[1], h_ref[1], gruw_ref[1], small_ref[4:5, :])

    # Hidden writeback only after the last h_ref read (hnew aliases hidden in).
    hnew_ref[0] = h0n
    hnew_ref[1] = h1n

    # --- fused prediction heads: lane-dense (B, 256), two aligned stores --------
    # lanes [0,128): raw node-type logits (74 valid)
    # lanes [128,256): sigmoid connection probs (100 valid)
    raw = jnp.dot(h1n.astype(jnp.bfloat16), bigw_ref[:, 0:2 * H],
                  preferred_element_type=jnp.float32) + small_ref[5:6, 0:2 * H]
    head_ref[:, 0:H] = raw[:, 0:H]
    head_ref[:, H:2 * H] = jax.nn.sigmoid(raw[:, H:2 * H])


# ---------------------------------------------------------------------------
# Wrapper
# ---------------------------------------------------------------------------
def _forward(text_embedding, graph_x, hidden_state, packed):
    # NOTE: the PyTorch `partial_graph is None` fallback (zeros graph repr.) is
    # host-side Python control flow handled by the caller, not in-kernel.
    B = text_embedding.shape[0]
    H = STATE_HID
    vmem = pl.BlockSpec(memory_space=pltpu.MemorySpace.VMEM)
    args = (text_embedding, graph_x, hidden_state,
            packed["small"], packed["big_w"], packed["gru_w"])

    flops = 2 * (NODE_TYPES * GRAPH_HID                 # graph encoder (M=1)
                 + 2 * B * (2 * H) * (4 * H)            # two fused GRU layers
                 + B * H * (2 * H))                     # fused heads
    transcendentals = B * (2 * 3 * H + H)               # GRU gates + head sigmoid
    bytes_accessed = (sum(int(a.size) * a.dtype.itemsize for a in args)
                      + B * 2 * H * 4 + 2 * B * H * 4)

    head_out, hnew = pl.pallas_call(
        decoder_kernel,
        out_shape=(jax.ShapeDtypeStruct((B, 2 * H), jnp.float32),
                   jax.ShapeDtypeStruct((2, B, H), jnp.float32)),
        in_specs=[vmem] * len(args),
        out_specs=(vmem, vmem),
        scratch_shapes=[pltpu.VMEM((2, B, 2 * H), jnp.bfloat16)],
        input_output_aliases={2: 1},   # hidden_state -> new hidden_state
        cost_estimate=pl.CostEstimate(flops=flops,
                                      transcendentals=transcendentals,
                                      bytes_accessed=bytes_accessed),
    )(*args)

    return {"node_type_logits": head_out[:, 0:NODE_TYPES],
            "connection_probs": head_out[:, H:H + CONN_DIM],
            "hidden_state": hnew}


simple_pooling_decoder = jax.jit(_forward)


# ---------------------------------------------------------------------------
# Self-test
# ---------------------------------------------------------------------------
if __name__ == "__main__":
    key = jax.random.PRNGKey(0)
    keys = jax.random.split(key, 17)

    B, N_NODES = 2, 8

    text = jax.random.normal(keys[0], (B, TEXT_DIM), jnp.float32)
    graph_x = jax.random.normal(keys[1], (N_NODES, NODE_TYPES), jnp.float32)
    hidden = jax.random.normal(keys[2], (2, B, STATE_HID), jnp.float32)

    def p(k, shape, scale=0.05):
        return scale * jax.random.normal(k, shape, jnp.float32)

    # All linear weights stored as (in_features, out_features); GRU gates packed [r|z|n].
    params = {
        "w_ge": p(keys[3], (NODE_TYPES, GRAPH_HID)),
        "b_ge": p(keys[4], (1, GRAPH_HID)),
        "ln_g": jnp.ones((1, GRAPH_HID), jnp.float32),
        "ln_b": jnp.zeros((1, GRAPH_HID), jnp.float32),
        "w_ih0": p(keys[5], (TEXT_DIM + GRAPH_HID, 3 * STATE_HID)),
        "w_hh0": p(keys[6], (STATE_HID, 3 * STATE_HID)),
        "b_ih0": p(keys[7], (1, 3 * STATE_HID)),
        "b_hh0": p(keys[8], (1, 3 * STATE_HID)),
        "w_ih1": p(keys[9], (STATE_HID, 3 * STATE_HID)),
        "w_hh1": p(keys[10], (STATE_HID, 3 * STATE_HID)),
        "b_ih1": p(keys[11], (1, 3 * STATE_HID)),
        "b_hh1": p(keys[12], (1, 3 * STATE_HID)),
        "w_nt": p(keys[13], (STATE_HID, NODE_TYPES)),
        "b_nt": p(keys[14], (1, NODE_TYPES)),
        "w_cp": p(keys[15], (STATE_HID, CONN_DIM)),
        "b_cp": p(keys[16], (1, CONN_DIM)),
    }

    # Pure-JAX fp32 reference (unfused) mirroring the PyTorch module.
    def reference(text, graph_x, hidden, prm):
        Bq = text.shape[0]
        g = jnp.broadcast_to(jnp.mean(graph_x, axis=0, keepdims=True), (Bq, NODE_TYPES))
        ge = jnp.maximum(g @ prm["w_ge"] + prm["b_ge"], 0.0)
        mu = ge.mean(-1, keepdims=True)
        var = ((ge - mu) ** 2).mean(-1, keepdims=True)
        ge = (ge - mu) / jnp.sqrt(var + LN_EPS) * prm["ln_g"] + prm["ln_b"]
        x = jnp.concatenate([text, ge], axis=-1)

        def gru(x, h, wih, whh, bih, bhh):
            Hh = STATE_HID
            gi = x @ wih + bih
            gh = h @ whh + bhh
            r = jax.nn.sigmoid(gi[:, :Hh] + gh[:, :Hh])
            z = jax.nn.sigmoid(gi[:, Hh:2 * Hh] + gh[:, Hh:2 * Hh])
            n = jnp.tanh(gi[:, 2 * Hh:] + r * gh[:, 2 * Hh:])
            return (1.0 - z) * n + z * h

        h0 = gru(x, hidden[0], prm["w_ih0"], prm["w_hh0"], prm["b_ih0"], prm["b_hh0"])
        h1 = gru(h0, hidden[1], prm["w_ih1"], prm["w_hh1"], prm["b_ih1"], prm["b_hh1"])
        logits = h1 @ prm["w_nt"] + prm["b_nt"]
        conn = jax.nn.sigmoid(h1 @ prm["w_cp"] + prm["b_cp"])
        return logits, conn, jnp.stack([h0, h1])

    ref_logits, ref_conn, ref_hidden = reference(text, graph_x, hidden, params)

    packed = pack_params(params)
    out = simple_pooling_decoder(text, graph_x, hidden, packed)
    jax.block_until_ready(out)

    assert out["node_type_logits"].shape == (B, NODE_TYPES)
    assert out["connection_probs"].shape == (B, CONN_DIM)
    assert out["hidden_state"].shape == (2, B, STATE_HID)
    assert bool(jnp.all(jnp.isfinite(out["node_type_logits"])))
    assert bool(jnp.all((out["connection_probs"] >= 0) & (out["connection_probs"] <= 1)))

    # bf16 weights -> allow small numerical drift vs fp32 reference.
    assert float(jnp.max(jnp.abs(out["node_type_logits"] - ref_logits))) < 5e-2
    assert float(jnp.max(jnp.abs(out["connection_probs"] - ref_conn))) < 5e-2
    assert float(jnp.max(jnp.abs(out["hidden_state"] - ref_hidden))) < 5e-2

    print("KERNEL_OK")
</pallas_src>

<mosaic_0001>
module attributes {stable_mosaic.version = 11 : i64} {
  func.func @decoder_kernel(%arg0: memref<2x64xf32, #tpu.memory_space<vmem>>, %arg1: memref<8x74xf32, #tpu.memory_space<vmem>>, %arg2: memref<2x2x128xf32, #tpu.memory_space<vmem>>, %arg3: memref<6x512xf32, #tpu.memory_space<vmem>>, %arg4: memref<128x320xbf16, #tpu.memory_space<vmem>>, %arg5: memref<2x256x512xbf16, #tpu.memory_space<vmem>>, %arg6: memref<2x256xf32, #tpu.memory_space<vmem>>, %arg7: memref<2x2x128xf32, #tpu.memory_space<vmem>>, %arg8: memref<2x2x256xbf16, #tpu.memory_space<vmem>>) attributes {dimension_semantics = [], scalar_prefetch = 0 : i64, scratch_operands = 1 : i64, tpu.core_type = #tpu.core_type<tc>} {
    %c0 = arith.constant 0 : index
    %c0_0 = arith.constant 0 : index
    %0 = vector.load %arg1[%c0, %c0_0] : memref<8x74xf32, #tpu.memory_space<vmem>>, vector<8x74xf32>
    %cst = arith.constant dense<0.000000e+00> : vector<74xf32>
    %1 = vector.multi_reduction <add>, %0, %cst [0] : vector<8x74xf32> to vector<74xf32>
    %2 = vector.shape_cast %1 : vector<74xf32> to vector<1x74xf32>
    %cst_1 = arith.constant 8.000000e+00 : f32
    %3 = vector.broadcast %cst_1 : f32 to vector<1x74xf32>
    %4 = arith.divf %2, %3 : vector<1x74xf32>
    %c0_2 = arith.constant 0 : index
    %c256 = arith.constant 256 : index
    %5 = vector.load %arg4[%c0_2, %c256] : memref<128x320xbf16, #tpu.memory_space<vmem>>, vector<74x64xbf16>
    %6 = arith.truncf %4 : vector<1x74xf32> to vector<1x74xbf16>
    %cst_3 = arith.constant dense<0.000000e+00> : vector<1x64xf32>
    %7 = tpu.matmul %6, %5, %cst_3 {dimension_numbers = #tpu.dot_dimension_numbers<[1], [0], [0], [1], [0, 0, 1, 1], [], []>} : vector<1x74xbf16>, vector<74x64xbf16>, vector<1x64xf32> -> vector<1x64xf32>
    %c0_4 = arith.constant 0 : index
    %c0_5 = arith.constant 0 : index
    %8 = vector.load %arg3[%c0_4, %c0_5] : memref<6x512xf32, #tpu.memory_space<vmem>>, vector<1x64xf32>
    %9 = arith.addf %7, %8 : vector<1x64xf32>
    %cst_6 = arith.constant 0.000000e+00 : f32
    %10 = vector.broadcast %cst_6 : f32 to vector<1x64xf32>
    %11 = arith.maximumf %9, %10 : vector<1x64xf32>
    %cst_7 = arith.constant dense<0.000000e+00> : vector<1xf32>
    %12 = vector.multi_reduction <add>, %11, %cst_7 [1] : vector<1x64xf32> to vector<1xf32>
    %13 = vector.shape_cast %12 : vector<1xf32> to vector<1x1xf32>
    %cst_8 = arith.constant 6.400000e+01 : f32
    %14 = vector.broadcast %cst_8 : f32 to vector<1x1xf32>
    %15 = arith.divf %13, %14 : vector<1x1xf32>
    %16 = vector.broadcast %15 : vector<1x1xf32> to vector<1x64xf32>
    %17 = arith.subf %11, %16 : vector<1x64xf32>
    %18 = arith.mulf %17, %17 : vector<1x64xf32>
    %cst_9 = arith.constant dense<0.000000e+00> : vector<1xf32>
    %19 = vector.multi_reduction <add>, %18, %cst_9 [1] : vector<1x64xf32> to vector<1xf32>
    %20 = vector.shape_cast %19 : vector<1xf32> to vector<1x1xf32>
    %cst_10 = arith.constant 6.400000e+01 : f32
    %21 = vector.broadcast %cst_10 : f32 to vector<1x1xf32>
    %22 = arith.divf %20, %21 : vector<1x1xf32>
    %23 = vector.broadcast %15 : vector<1x1xf32> to vector<1x64xf32>
    %24 = arith.subf %11, %23 : vector<1x64xf32>
    %cst_11 = arith.constant 9.99999974E-6 : f32
    %25 = vector.broadcast %cst_11 : f32 to vector<1x1xf32>
    %26 = arith.addf %22, %25 : vector<1x1xf32>
    %27 = math.rsqrt %26 : vector<1x1xf32>
    %28 = vector.broadcast %27 : vector<1x1xf32> to vector<1x64xf32>
    %29 = arith.mulf %24, %28 : vector<1x64xf32>
    %c1 = arith.constant 1 : index
    %c0_12 = arith.constant 0 : index
    %30 = vector.load %arg3[%c1, %c0_12] : memref<6x512xf32, #tpu.memory_space<vmem>>, vector<1x64xf32>
    %31 = arith.mulf %29, %30 : vector<1x64xf32>
    %c2 = arith.constant 2 : index
    %c0_13 = arith.constant 0 : index
    %32 = vector.load %arg3[%c2, %c0_13] : memref<6x512xf32, #tpu.memory_space<vmem>>, vector<1x64xf32>
    %33 = arith.addf %31, %32 : vector<1x64xf32>
    %c0_14 = arith.constant 0 : index
    %c0_15 = arith.constant 0 : index
    %34 = vector.load %arg0[%c0_14, %c0_15] : memref<2x64xf32, #tpu.memory_space<vmem>>, vector<2x64xf32>
    %35 = arith.truncf %34 : vector<2x64xf32> to vector<2x64xbf16>
    %c0_16 = arith.constant 0 : index
    %c0_17 = arith.constant 0 : index
    %c0_18 = arith.constant 0 : index
    %36 = vector.load %arg8[%c0_16, %c0_17, %c0_18] : memref<2x2x256xbf16, #tpu.memory_space<vmem>>, vector<1x2x64xbf16>
    %37 = vector.shape_cast %36 : vector<1x2x64xbf16> to vector<2x64xbf16>
    %38 = vector.shape_cast %35 : vector<2x64xbf16> to vector<1x2x64xbf16>
    tpu.vector_store %arg8[%c0_16, %c0_17, %c0_18], %38 {strides = array<i32>} : memref<2x2x256xbf16, #tpu.memory_space<vmem>>, vector<1x2x64xbf16>,
    %39 = arith.truncf %33 : vector<1x64xf32> to vector<1x64xbf16>
    %40 = vector.shape_cast %39 : vector<1x64xbf16> to vector<1x64xbf16>
    %41 = vector.broadcast %40 : vector<1x64xbf16> to vector<2x64xbf16>
    %c0_19 = arith.constant 0 : index
    %c0_20 = arith.constant 0 : index
    %c64 = arith.constant 64 : index
    %42 = vector.load %arg8[%c0_19, %c0_20, %c64] : memref<2x2x256xbf16, #tpu.memory_space<vmem>>, vector<1x2x64xbf16>
    %43 = vector.shape_cast %42 : vector<1x2x64xbf16> to vector<2x64xbf16>
    %44 = vector.shape_cast %41 : vector<2x64xbf16> to vector<1x2x64xbf16>
    tpu.vector_store %arg8[%c0_19, %c0_20, %c64], %44 {strides = array<i32>} : memref<2x2x256xbf16, #tpu.memory_space<vmem>>, vector<1x2x64xbf16>,
    %c0_21 = arith.constant 0 : index
    %c0_22 = arith.constant 0 : index
    %c0_23 = arith.constant 0 : index
    %45 = vector.load %arg2[%c0_21, %c0_22, %c0_23] : memref<2x2x128xf32, #tpu.memory_space<vmem>>, vector<1x2x128xf32>
    %46 = vector.shape_cast %45 : vector<1x2x128xf32> to vector<2x128xf32>
    %47 = arith.truncf %46 : vector<2x128xf32> to vector<2x128xbf16>
    %c0_24 = arith.constant 0 : index
    %c0_25 = arith.constant 0 : index
    %c128 = arith.constant 128 : index
    %48 = vector.load %arg8[%c0_24, %c0_25, %c128] : memref<2x2x256xbf16, #tpu.memory_space<vmem>>, vector<1x2x128xbf16>
    %49 = vector.shape_cast %48 : vector<1x2x128xbf16> to vector<2x128xbf16>
    %50 = vector.shape_cast %47 : vector<2x128xbf16> to vector<1x2x128xbf16>
    tpu.vector_store %arg8[%c0_24, %c0_25, %c128], %50 {strides = array<i32>} : memref<2x2x256xbf16, #tpu.memory_space<vmem>>, vector<1x2x128xbf16>,
    %c1_26 = arith.constant 1 : index
    %c0_27 = arith.constant 0 : index
    %c0_28 = arith.constant 0 : index
    %51 = vector.load %arg2[%c1_26, %c0_27, %c0_28] : memref<2x2x128xf32, #tpu.memory_space<vmem>>, vector<1x2x128xf32>
    %52 = vector.shape_cast %51 : vector<1x2x128xf32> to vector<2x128xf32>
    %53 = arith.truncf %52 : vector<2x128xf32> to vector<2x128xbf16>
    %c1_29 = arith.constant 1 : index
    %c0_30 = arith.constant 0 : index
    %c128_31 = arith.constant 128 : index
    %54 = vector.load %arg8[%c1_29, %c0_30, %c128_31] : memref<2x2x256xbf16, #tpu.memory_space<vmem>>, vector<1x2x128xbf16>
    %55 = vector.shape_cast %54 : vector<1x2x128xbf16> to vector<2x128xbf16>
    %56 = vector.shape_cast %53 : vector<2x128xbf16> to vector<1x2x128xbf16>
    tpu.vector_store %arg8[%c1_29, %c0_30, %c128_31], %56 {strides = array<i32>} : memref<2x2x256xbf16, #tpu.memory_space<vmem>>, vector<1x2x128xbf16>,
    %c0_32 = arith.constant 0 : index
    %c0_33 = arith.constant 0 : index
    %c0_34 = arith.constant 0 : index
    %57 = vector.load %arg8[%c0_32, %c0_33, %c0_34] : memref<2x2x256xbf16, #tpu.memory_space<vmem>>, vector<1x2x256xbf16>
    %58 = vector.shape_cast %57 : vector<1x2x256xbf16> to vector<2x256xbf16>
    %c0_35 = arith.constant 0 : index
    %c0_36 = arith.constant 0 : index
    %c0_37 = arith.constant 0 : index
    %59 = vector.load %arg2[%c0_35, %c0_36, %c0_37] : memref<2x2x128xf32, #tpu.memory_space<vmem>>, vector<1x2x128xf32>
    %60 = vector.shape_cast %59 : vector<1x2x128xf32> to vector<2x128xf32>
    %c0_38 = arith.constant 0 : index
    %c0_39 = arith.constant 0 : index
    %c0_40 = arith.constant 0 : index
    %61 = vector.load %arg5[%c0_38, %c0_39, %c0_40] : memref<2x256x512xbf16, #tpu.memory_space<vmem>>, vector<1x256x512xbf16>
    %62 = vector.shape_cast %61 : vector<1x256x512xbf16> to vector<256x512xbf16>
    %c3 = arith.constant 3 : index
    %c0_41 = arith.constant 0 : index
    %63 = vector.load %arg3[%c3, %c0_41] : memref<6x512xf32, #tpu.memory_space<vmem>>, vector<1x512xf32>
    %cst_42 = arith.constant dense<0.000000e+00> : vector<2x512xf32>
    %64 = tpu.matmul %58, %62, %cst_42 {dimension_numbers = #tpu.dot_dimension_numbers<[1], [0], [0], [1], [0, 0, 1, 1], [], []>} : vector<2x256xbf16>, vector<256x512xbf16>, vector<2x512xf32> -> vector<2x512xf32>
    %65 = vector.broadcast %63 : vector<1x512xf32> to vector<2x512xf32>
    %66 = arith.addf %64, %65 : vector<2x512xf32>
    %67 = vector.extract_strided_slice %66 {offsets = [0, 0], sizes = [2, 256], strides = [1, 1]} : vector<2x512xf32> to vector<2x256xf32>
    %68 = arith.negf %67 : vector<2x256xf32>
    %69 = math.exp %68 : vector<2x256xf32>
    %cst_43 = arith.constant 1.000000e+00 : f32
    %70 = vector.broadcast %cst_43 : f32 to vector<2x256xf32>
    %71 = arith.addf %70, %69 : vector<2x256xf32>
    %72 = arith.divf %70, %71 : vector<2x256xf32>
    %73 = vector.extract_strided_slice %72 {offsets = [0, 0], sizes = [2, 128], strides = [1, 1]} : vector<2x256xf32> to vector<2x128xf32>
    %74 = vector.extract_strided_slice %72 {offsets = [0, 128], sizes = [2, 128], strides = [1, 1]} : vector<2x256xf32> to vector<2x128xf32>
    %75 = vector.extract_strided_slice %66 {offsets = [0, 256], sizes = [2, 128], strides = [1, 1]} : vector<2x512xf32> to vector<2x128xf32>
    %76 = vector.extract_strided_slice %66 {offsets = [0, 384], sizes = [2, 128], strides = [1, 1]} : vector<2x512xf32> to vector<2x128xf32>
    %77 = arith.mulf %73, %76 : vector<2x128xf32>
    %78 = arith.addf %75, %77 : vector<2x128xf32>
    %79 = math.tanh %78 : vector<2x128xf32>
    %cst_44 = arith.constant 1.000000e+00 : f32
    %80 = vector.broadcast %cst_44 : f32 to vector<2x128xf32>
    %81 = arith.subf %80, %74 : vector<2x128xf32>
    %82 = arith.mulf %81, %79 : vector<2x128xf32>
    %83 = arith.mulf %74, %60 : vector<2x128xf32>
    %84 = arith.addf %82, %83 : vector<2x128xf32>
    %85 = arith.truncf %84 : vector<2x128xf32> to vector<2x128xbf16>
    %c1_45 = arith.constant 1 : index
    %c0_46 = arith.constant 0 : index
    %c0_47 = arith.constant 0 : index
    %86 = vector.load %arg8[%c1_45, %c0_46, %c0_47] : memref<2x2x256xbf16, #tpu.memory_space<vmem>>, vector<1x2x128xbf16>
    %87 = vector.shape_cast %86 : vector<1x2x128xbf16> to vector<2x128xbf16>
    %88 = vector.shape_cast %85 : vector<2x128xbf16> to vector<1x2x128xbf16>
    tpu.vector_store %arg8[%c1_45, %c0_46, %c0_47], %88 {strides = array<i32>} : memref<2x2x256xbf16, #tpu.memory_space<vmem>>, vector<1x2x128xbf16>,
    %c1_48 = arith.constant 1 : index
    %c0_49 = arith.constant 0 : index
    %c0_50 = arith.constant 0 : index
    %89 = vector.load %arg8[%c1_48, %c0_49, %c0_50] : memref<2x2x256xbf16, #tpu.memory_space<vmem>>, vector<1x2x256xbf16>
    %90 = vector.shape_cast %89 : vector<1x2x256xbf16> to vector<2x256xbf16>
    %c1_51 = arith.constant 1 : index
    %c0_52 = arith.constant 0 : index
    %c0_53 = arith.constant 0 : index
    %91 = vector.load %arg2[%c1_51, %c0_52, %c0_53] : memref<2x2x128xf32, #tpu.memory_space<vmem>>, vector<1x2x128xf32>
    %92 = vector.shape_cast %91 : vector<1x2x128xf32> to vector<2x128xf32>
    %c1_54 = arith.constant 1 : index
    %c0_55 = arith.constant 0 : index
    %c0_56 = arith.constant 0 : index
    %93 = vector.load %arg5[%c1_54, %c0_55, %c0_56] : memref<2x256x512xbf16, #tpu.memory_space<vmem>>, vector<1x256x512xbf16>
    %94 = vector.shape_cast %93 : vector<1x256x512xbf16> to vector<256x512xbf16>
    %c4 = arith.constant 4 : index
    %c0_57 = arith.constant 0 : index
    %95 = vector.load %arg3[%c4, %c0_57] : memref<6x512xf32, #tpu.memory_space<vmem>>, vector<1x512xf32>
    %cst_58 = arith.constant dense<0.000000e+00> : vector<2x512xf32>
    %96 = tpu.matmul %90, %94, %cst_58 {dimension_numbers = #tpu.dot_dimension_numbers<[1], [0], [0], [1], [0, 0, 1, 1], [], []>} : vector<2x256xbf16>, vector<256x512xbf16>, vector<2x512xf32> -> vector<2x512xf32>
    %97 = vector.broadcast %95 : vector<1x512xf32> to vector<2x512xf32>
    %98 = arith.addf %96, %97 : vector<2x512xf32>
    %99 = vector.extract_strided_slice %98 {offsets = [0, 0], sizes = [2, 256], strides = [1, 1]} : vector<2x512xf32> to vector<2x256xf32>
    %100 = arith.negf %99 : vector<2x256xf32>
    %101 = math.exp %100 : vector<2x256xf32>
    %cst_59 = arith.constant 1.000000e+00 : f32
    %102 = vector.broadcast %cst_59 : f32 to vector<2x256xf32>
    %103 = arith.addf %102, %101 : vector<2x256xf32>
    %104 = arith.divf %102, %103 : vector<2x256xf32>
    %105 = vector.extract_strided_slice %104 {offsets = [0, 0], sizes = [2, 128], strides = [1, 1]} : vector<2x256xf32> to vector<2x128xf32>
    %106 = vector.extract_strided_slice %104 {offsets = [0, 128], sizes = [2, 128], strides = [1, 1]} : vector<2x256xf32> to vector<2x128xf32>
    %107 = vector.extract_strided_slice %98 {offsets = [0, 256], sizes = [2, 128], strides = [1, 1]} : vector<2x512xf32> to vector<2x128xf32>
    %108 = vector.extract_strided_slice %98 {offsets = [0, 384], sizes = [2, 128], strides = [1, 1]} : vector<2x512xf32> to vector<2x128xf32>
    %109 = arith.mulf %105, %108 : vector<2x128xf32>
    %110 = arith.addf %107, %109 : vector<2x128xf32>
    %111 = math.tanh %110 : vector<2x128xf32>
    %cst_60 = arith.constant 1.000000e+00 : f32
    %112 = vector.broadcast %cst_60 : f32 to vector<2x128xf32>
    %113 = arith.subf %112, %106 : vector<2x128xf32>
    %114 = arith.mulf %113, %111 : vector<2x128xf32>
    %115 = arith.mulf %106, %92 : vector<2x128xf32>
    %116 = arith.addf %114, %115 : vector<2x128xf32>
    %c0_61 = arith.constant 0 : index
    %c0_62 = arith.constant 0 : index
    %c0_63 = arith.constant 0 : index
    %117 = vector.load %arg7[%c0_61, %c0_62, %c0_63] : memref<2x2x128xf32, #tpu.memory_space<vmem>>, vector<1x2x128xf32>
    %118 = vector.shape_cast %117 : vector<1x2x128xf32> to vector<2x128xf32>
    %119 = vector.shape_cast %84 : vector<2x128xf32> to vector<1x2x128xf32>
    tpu.vector_store %arg7[%c0_61, %c0_62, %c0_63], %119 {strides = array<i32>} : memref<2x2x128xf32, #tpu.memory_space<vmem>>, vector<1x2x128xf32>,
    %c1_64 = arith.constant 1 : index
    %c0_65 = arith.constant 0 : index
    %c0_66 = arith.constant 0 : index
    %120 = vector.load %arg7[%c1_64, %c0_65, %c0_66] : memref<2x2x128xf32, #tpu.memory_space<vmem>>, vector<1x2x128xf32>
    %121 = vector.shape_cast %120 : vector<1x2x128xf32> to vector<2x128xf32>
    %122 = vector.shape_cast %116 : vector<2x128xf32> to vector<1x2x128xf32>
    tpu.vector_store %arg7[%c1_64, %c0_65, %c0_66], %122 {strides = array<i32>} : memref<2x2x128xf32, #tpu.memory_space<vmem>>, vector<1x2x128xf32>,
    %123 = arith.truncf %116 : vector<2x128xf32> to vector<2x128xbf16>
    %c0_67 = arith.constant 0 : index
    %c0_68 = arith.constant 0 : index
    %124 = vector.load %arg4[%c0_67, %c0_68] : memref<128x320xbf16, #tpu.memory_space<vmem>>, vector<128x256xbf16>
    %cst_69 = arith.constant dense<0.000000e+00> : vector<2x256xf32>
    %125 = tpu.matmul %123, %124, %cst_69 {dimension_numbers = #tpu.dot_dimension_numbers<[1], [0], [0], [1], [0, 0, 1, 1], [], []>} : vector<2x128xbf16>, vector<128x256xbf16>, vector<2x256xf32> -> vector<2x256xf32>
    %c5 = arith.constant 5 : index
    %c0_70 = arith.constant 0 : index
    %126 = vector.load %arg3[%c5, %c0_70] : memref<6x512xf32, #tpu.memory_space<vmem>>, vector<1x256xf32>
    %127 = vector.broadcast %126 : vector<1x256xf32> to vector<2x256xf32>
    %128 = arith.addf %125, %127 : vector<2x256xf32>
    %129 = vector.extract_strided_slice %128 {offsets = [0, 0], sizes = [2, 128], strides = [1, 1]} : vector<2x256xf32> to vector<2x128xf32>
    %c0_71 = arith.constant 0 : index
    %c0_72 = arith.constant 0 : index
    %130 = vector.load %arg6[%c0_71, %c0_72] : memref<2x256xf32, #tpu.memory_space<vmem>>, vector<2x128xf32>
    tpu.vector_store %arg6[%c0_71, %c0_72], %129 {strides = array<i32>} : memref<2x256xf32, #tpu.memory_space<vmem>>, vector<2x128xf32>,
    %131 = vector.extract_strided_slice %128 {offsets = [0, 128], sizes = [2, 128], strides = [1, 1]} : vector<2x256xf32> to vector<2x128xf32>
    %132 = arith.negf %131 : vector<2x128xf32>
    %133 = math.exp %132 : vector<2x128xf32>
    %cst_73 = arith.constant 1.000000e+00 : f32
    %134 = vector.broadcast %cst_73 : f32 to vector<2x128xf32>
    %135 = arith.addf %134, %133 : vector<2x128xf32>
    %136 = arith.divf %134, %135 : vector<2x128xf32>
    %c0_74 = arith.constant 0 : index
    %c128_75 = arith.constant 128 : index
    %137 = vector.load %arg6[%c0_74, %c128_75] : memref<2x256xf32, #tpu.memory_space<vmem>>, vector<2x128xf32>
    tpu.vector_store %arg6[%c0_74, %c128_75], %136 {strides = array<i32>} : memref<2x256xf32, #tpu.memory_space<vmem>>, vector<2x128xf32>,
    return
  }
}

</mosaic_0001>

<bundles_post_ra>
// kernel: _forward.1
= control target key start
LH: loop header
LB: loop body
LE: loop exit
PB: predicated region body
PF: predicated region fallthrough
CT: control target
= control target key end

     0   :  { %13 = vsyncpa [#allocation4], 0  ;;  %s1904_s24 = smov [#allocation3]   ;;  %s2116_s0 = inlined_call_operand.vmem [shape: f32[2,64], index: 0, kind: input, shape index: {}]   ;;  %s2117_s1 = inlined_call_operand.vmem [shape: f32[8,74], index: 1, kind: input, shape index: {}]   ;;  %s2118_s2 = inlined_call_operand.vmem [shape: f32[2,2,128], index: 2, kind: input, shape index: {}, may-alias: {2,7}]   ;;  %s2119_s3 = inlined_call_operand.vmem [shape: f32[6,512], index: 3, kind: input, shape index: {}]   ;;  %s2120_s4 = inlined_call_operand.vmem [shape: bf16[128,320], index: 4, kind: input, shape index: {}]   ;;  %s2121_s5 = inlined_call_operand.hbm [shape: bf16[2,256,512], index: 5, kind: input, shape index: {}]   ;;  %s2122_s6 = inlined_call_operand.vmem [shape: f32[2,256], index: 6, kind: output, shape index: {0}]   ;;  %s2123_s7 = inlined_call_operand.vmem [shape: f32[2,2,128], index: 7, kind: output, shape index: {1}, may-alias: {2,7}]  }
   0x1   :  { %s29_s25 = sshll.u32 %s1904_s24, 4  ;;  %s1880_s28 = scalar_lea.hbm %s2121_s5, 16384  ;;  %s30_s25 = int_to_ptr.vmem [resolvable:$true] %s29_s25 }
   0x2   :  { %p1881_p0 = scmp.ne.s32.totalorder %s2121_s5, %s1880_s28  ;;  %p1884_p1 = scmp.lt.u32.totalorder %s1880_s28, %s2121_s5 }
   0x4   :  { %p1886_p2 = pnand %p1884_p1, %p1881_p0 }
   0x6   :  { %1889 = shalt.err (!%p1886_p2)
}
   0x7   :  { %s1890_s10 = scalar_lea.vmem %s30_s25, 16384  ;;  %p1895_p4 = scmp.lt.s32.totalorder %s30_s25, %s30_s25 }
   0x8   :  { %p1891_p3 = scmp.ne.s32.totalorder %s30_s25, %s1890_s10  ;;  %p1896_p5 = scmp.lt.s32.totalorder %s1890_s10, %s1890_s10 }
   0xa   :  { %p1897_p6 = por %p1896_p5, %p1895_p4 }
   0xc   :  { %p1898_p7 = pnand %p1897_p6, %p1891_p3 }
   0xe   :  { %1901 = shalt.err (!%p1898_p7)
}
   0xf   :  { %s1905_s11 = smov 256   ;;  %s1906_s12 = smov 16  }
  0x10   :  { %35 = dma.hbm_to_vmem [thread:$0]  %s2121_s5, 16384, %s30_s25, [#allocation4], %s1905_s11, %s1905_s11, %s1906_s12  }
  0x11   :  { %1902 = dma.done.wait [#allocation4], 16384  }
  0x12   :  { %1903 = vsyncadd [#allocation4], 4294950912  ;;  %v1907_v0 = vmov 0.0   ;;  %vm1908_vm0 = vmmov 0   ;;  %v1633_v1 = vld [vmem:[%s2120_s4 + $0x8] ss:$12 sps:$4 sm:$0xff]  }
  0x13   :  { %1611 = vmatprep.subr.bf16.mxu0 %v1907_v0  ;;  %1621 = vmatprep.mubr.msk.bf16.mxu0 %vm1908_vm0, %v1907_v0  ;;  %vm41_vm1 = vcmask 605184   ;;  %v1634_v2 = vld [vmem:[%s2120_s4 + $0x20] ss:$12 sps:$4 sm:$0xff]   ;;  %v1635_v4 = vld [vmem:[%s2120_s4 + $0x38] ss:$12 sps:$4 sm:$0xff]   ;;  %vm95_vm2 = vcmask 1044480  }
  0x14   :  { %1612 = vmatpush3.bf16.msra.mxu0 %v1633_v1  ;;  %v40_v3 = vld [vmem:[%s2117_s1] sm:$0xff]  ;;  %v1636_v7 = vld [vmem:[%s2120_s4 + $0x50] ss:$12 sps:$4 sm:$0xff]   ;;  %v1637_v9 = vld [vmem:[%s2120_s4 + $0x68] ss:$12 sps:$4 sm:$0x1f]  }
  0x15   :  { %1613 = vmatprep.subr.bf16.mxu0 %v1907_v0  ;;  %v42_v5 = vsel %vm41_vm1, %v40_v3, 0.0  ;;  %v97_v13 = vsel %vm95_vm2, %v1637_v9, 0  ;;  %v159_v17 = vld [vmem:[%s2116_s0] sm:$0x3]  ;;  %vm140_vm3 = vcmask 516096   ;;  %s1910_s11 = smov 64  }
  0x16   :  { %v43_v6 = vrot.slane %v42_v5, 4  ;;  %v160_v18 = vpack.c.bf16 %v159_v17, %v159_v17  ;;  %v62_v19 = vld [vmem:[%s2119_s3] ss:$0 sm:$0xff]  ;;  %v1638_v32 = vld [vmem:[#allocation3 + $0x4] ss:$16 sps:$4 sm:$0xff]   ;;  %vm188_vm4 = vcmask 1040896  }
  0x17   :  { %v1640_v33 = vld [vmem:[#allocation3 + $0x8] ss:$16 sps:$4 sm:$0xff]   ;;  %v1642_v34 = vld [vmem:[#allocation3 + $0xc] ss:$16 sps:$4 sm:$0xff]   ;;  %v1643_v35 = vld [vmem:[#allocation3] ss:$16 sps:$4 sm:$0xff]   ;;  %632 = vmatprep.subr.bf16.mxu1 %v1638_v32 }
  0x18   :  { %1614 = vmatpush3.bf16.msra.mxu0 %v1634_v2  ;;  %v44_v8 = vadd.f32 %v43_v6, %v42_v5  ;;  %161 = vst.msk [vmem:[#allocation2] sm:$0x1] %vm140_vm3, %v160_v18  ;;  %v1644_v36 = vld [vmem:[#allocation3 + $0x24] ss:$16 sps:$4 sm:$0xff]   ;;  %v1648_v37 = vld [vmem:[#allocation3 + $0x2c] ss:$16 sps:$4 sm:$0xff]   ;;  %633 = vmatpush1.bf16.msra.mxu1 %v1643_v35 }
  0x19   :  { %1615 = vmatprep.subr.bf16.mxu0 %v1907_v0  ;;  %v1646_v38 = vld [vmem:[#allocation3 + $0x28] ss:$16 sps:$4 sm:$0xff]   ;;  %v1649_v39 = vld [vmem:[#allocation3 + $0x20] ss:$16 sps:$4 sm:$0xff]   ;;  %634 = vmatprep.subr.bf16.mxu1 %v1644_v36  ;;  %v1650_v40 = vld [vmem:[#allocation3 + $0x44] ss:$16 sps:$4 sm:$0xff]  }
  0x1a   :  { %v45_v10 = vrot.slane %v44_v8, 2  ;;  %v1654_v41 = vld [vmem:[#allocation3 + $0x4c] ss:$16 sps:$4 sm:$0xff]   ;;  %v1652_v42 = vld [vmem:[#allocation3 + $0x48] ss:$16 sps:$4 sm:$0xff]  }
  0x1b   :  { %v1655_v43 = vld [vmem:[#allocation3 + $0x40] ss:$16 sps:$4 sm:$0xff]   ;;  %v1656_v44 = vld [vmem:[#allocation3 + $0x64] ss:$16 sps:$4 sm:$0xff]   ;;  %v1660_v45 = vld [vmem:[#allocation3 + $0x6c] ss:$16 sps:$4 sm:$0xff]  }
  0x1c   :  { %1616 = vmatpush3.bf16.msra.mxu0 %v1635_v4  ;;  %v46_v11 = vadd.f32 %v45_v10, %v44_v8  ;;  %635 = vmatpush1.bf16.msra.mxu1 %v1649_v39  ;;  %v1658_v46 = vld [vmem:[#allocation3 + $0x68] ss:$16 sps:$4 sm:$0xff]   ;;  %v1661_v47 = vld [vmem:[#allocation3 + $0x60] ss:$16 sps:$4 sm:$0xff]   ;;  %v1662_v48 = vld [vmem:[#allocation3 + $0x84] ss:$16 sps:$4 sm:$0xff]  }
  0x1d   :  { %1617 = vmatprep.subr.bf16.mxu0 %v1907_v0  ;;  %636 = vmatprep.subr.bf16.mxu1 %v1650_v40  ;;  %v1666_v49 = vld [vmem:[#allocation3 + $0x8c] ss:$16 sps:$4 sm:$0xff]   ;;  %v1664_v50 = vld [vmem:[#allocation3 + $0x88] ss:$16 sps:$4 sm:$0xff]   ;;  %v1667_v51 = vld [vmem:[#allocation3 + $0x80] ss:$16 sps:$4 sm:$0xff]  }
  0x1e   :  { %v47_v12 = vrot.slane %v46_v11, 1  ;;  %v1668_v52 = vld [vmem:[#allocation3 + $0xa4] ss:$16 sps:$4 sm:$0xff]   ;;  %v1672_v53 = vld [vmem:[#allocation3 + $0xac] ss:$16 sps:$4 sm:$0xff]  }
  0x1f   :  { %v1670_v54 = vld [vmem:[#allocation3 + $0xa8] ss:$16 sps:$4 sm:$0xff]   ;;  %v1673_v55 = vld [vmem:[#allocation3 + $0xa0] ss:$16 sps:$4 sm:$0xff]   ;;  %v1674_v56 = vld [vmem:[#allocation3 + $0xc4] ss:$16 sps:$4 sm:$0xff]  }
  0x20   :  { %1618 = vmatpush3.bf16.msra.mxu0 %v1636_v7  ;;  %v48_v14 = vadd.f32 %v47_v12, %v46_v11  ;;  %637 = vmatpush1.bf16.msra.mxu1 %v1655_v43  ;;  %v1678_v57 = vld [vmem:[#allocation3 + $0xcc] ss:$16 sps:$4 sm:$0xff]   ;;  %v1676_v58 = vld [vmem:[#allocation3 + $0xc8] ss:$16 sps:$4 sm:$0xff]   ;;  %v1679_v59 = vld [vmem:[#allocation3 + $0xc0] ss:$16 sps:$4 sm:$0xff]  }
  0x21   :  { %1619 = vmatprep.subr.bf16.mxu0 %v1907_v0  ;;  %638 = vmatprep.subr.bf16.mxu1 %v1656_v44  ;;  %v1680_v60 = vld [vmem:[#allocation3 + $0xe4] ss:$16 sps:$4 sm:$0xff]   ;;  %v1684_v61 = vld [vmem:[#allocation3 + $0xec] ss:$16 sps:$4 sm:$0xff]   ;;  %v1682_v62 = vld [vmem:[#allocation3 + $0xe8] ss:$16 sps:$4 sm:$0xff]  }
  0x22   :  { %v50_v15 = vmul.f32 0.125, %v48_v14  ;;  %v1685_v63 = vld [vmem:[#allocation3 + $0xe0] ss:$16 sps:$4 sm:$0xff]   ;;  %v1686_v0 = vld [vmem:[#allocation3 + $0x104] ss:$16 sps:$4 sm:$0xff]  }
  0x23   :  { %v1690_v1 = vld [vmem:[#allocation3 + $0x10c] ss:$16 sps:$4 sm:$0xff]   ;;  %v1688_v2 = vld [vmem:[#allocation3 + $0x108] ss:$16 sps:$4 sm:$0xff]   ;;  %v1691_v3 = vld [vmem:[#allocation3 + $0x100] ss:$16 sps:$4 sm:$0xff]  }
  0x24   :  { %1620 = vmatpush3.bf16.msra.mxu0 %v97_v13  ;;  %v61_v16 = vpack.c.bf16 %v50_v15, %v50_v15  ;;  %639 = vmatpush1.bf16.msra.mxu1 %v1661_v47  ;;  %v1692_v4 = vld [vmem:[#allocation3 + $0x124] ss:$16 sps:$4 sm:$0xff]   ;;  %v1696_v5 = vld [vmem:[#allocation3 + $0x12c] ss:$16 sps:$4 sm:$0xff]   ;;  %v1694_v6 = vld [vmem:[#allocation3 + $0x128] ss:$16 sps:$4 sm:$0xff]  }
  0x25   :  { %673 = vmatprep.subr.bf16.mxu0 %v1642_v34  ;;  %640 = vmatprep.subr.bf16.mxu1 %v1662_v48  ;;  %v1697_v7 = vld [vmem:[#allocation3 + $0x120] ss:$16 sps:$4 sm:$0xff]   ;;  %v1698_v8 = vld [vmem:[#allocation3 + $0x144] ss:$16 sps:$4 sm:$0xff]   ;;  %v1702_v9 = vld [vmem:[#allocation3 + $0x14c] ss:$16 sps:$4 sm:$0xff]  }
  0x26   :  { %v1700_v10 = vld [vmem:[#allocation3 + $0x148] ss:$16 sps:$4 sm:$0xff]   ;;  %v1703_v11 = vld [vmem:[#allocation3 + $0x140] ss:$16 sps:$4 sm:$0xff]   ;;  %v1704_v12 = vld [vmem:[#allocation3 + $0x164] ss:$16 sps:$4 sm:$0xff]  }
  0x27   :  { %1622 = vmatmul.mubr.msk.bf16.vlgmr.msra.gmra.mrb[0].mxu0 %vm41_vm1, %v61_v16  ;;  %v1708_v13 = vld [vmem:[#allocation3 + $0x16c] ss:$16 sps:$4 sm:$0xff]   ;;  %v1706_v14 = vld [vmem:[#allocation3 + $0x168] ss:$16 sps:$4 sm:$0xff]   ;;  %v1709_v15 = vld [vmem:[#allocation3 + $0x160] ss:$16 sps:$4 sm:$0xff]  }
  0x28   :  { %674 = vmatpush1.bf16.msra.mxu0 %v1640_v33  ;;  %641 = vmatpush1.bf16.msra.mxu1 %v1667_v51  ;;  %v1710_v16 = vld [vmem:[#allocation3 + $0x184] ss:$16 sps:$4 sm:$0xff]   ;;  %v1714_v17 = vld [vmem:[#allocation3 + $0x18c] ss:$16 sps:$4 sm:$0xff]   ;;  %v1712_v18 = vld [vmem:[#allocation3 + $0x188] ss:$16 sps:$4 sm:$0xff]  }
  0x29   :  { %675 = vmatprep.subr.bf16.mxu0 %v1648_v37  ;;  %642 = vmatprep.subr.bf16.mxu1 %v1668_v52  ;;  %v1716_v35 = vld [vmem:[#allocation3 + $0x1a4] ss:$16 sps:$4 sm:$0xff]   ;;  %v1720_v36 = vld [vmem:[#allocation3 + $0x1ac] ss:$16 sps:$4 sm:$0xff]   ;;  %v1718_v37 = vld [vmem:[#allocation3 + $0x1a8] ss:$16 sps:$4 sm:$0xff]  }
  0x2a   :  { %v1722_v39 = vld [vmem:[#allocation3 + $0x1c4] ss:$16 sps:$4 sm:$0xff]   ;;  %v1727_v43 = vld [vmem:[#allocation3 + $0x1c0] ss:$16 sps:$4 sm:$0xff]   ;;  %v1732_v47 = vld [vmem:[#allocation3 + $0x1ec] ss:$16 sps:$4 sm:$0xff]  }
  0x2b   :  { %v1733_v51 = vld [vmem:[#allocation3 + $0x1e0] ss:$16 sps:$4 sm:$0xff]  }
  0x2c   :  { %676 = vmatpush1.bf16.msra.mxu0 %v1646_v38  ;;  %643 = vmatpush1.bf16.msra.mxu1 %v1673_v55  ;;  %v1721_v38 = vld [vmem:[#allocation3 + $0x1a0] ss:$16 sps:$4 sm:$0xff]   ;;  %v1736_v55 = vld [vmem:[#allocation3 + $0x204] ss:$16 sps:$4 sm:$0xff]  }
  0x2d   :  { %677 = vmatprep.subr.bf16.mxu0 %v1654_v41  ;;  %644 = vmatprep.subr.bf16.mxu1 %v1674_v56  ;;  %v1726_v41 = vld [vmem:[#allocation3 + $0x1cc] ss:$16 sps:$4 sm:$0xff]  }
  0x2e   :  { %v1739_v56 = vld [vmem:[#allocation3 + $0x20c] ss:$16 sps:$4 sm:$0xff]  }
  0x30   :  { %678 = vmatpush1.bf16.msra.mxu0 %v1652_v42  ;;  %645 = vmatpush1.bf16.msra.mxu1 %v1679_v59  ;;  %v1724_v42 = vld [vmem:[#allocation3 + $0x1c8] ss:$16 sps:$4 sm:$0xff]  }
  0x31   :  { %679 = vmatprep.subr.bf16.mxu0 %v1660_v45  ;;  %646 = vmatprep.subr.bf16.mxu1 %v1680_v60 }
  0x34   :  { %680 = vmatpush1.bf16.msra.mxu0 %v1658_v46  ;;  %647 = vmatpush1.bf16.msra.mxu1 %v1685_v63  ;;  %v1728_v46 = vld [vmem:[#allocation3 + $0x1e4] ss:$16 sps:$4 sm:$0xff]  }
  0x35   :  { %681 = vmatprep.subr.bf16.mxu0 %v1666_v49  ;;  %648 = vmatprep.subr.bf16.mxu1 %v1686_v0  ;;  %v1742_v0 = vld [vmem:[#allocation3 + $0x224] ss:$16 sps:$4 sm:$0xff]  }
  0x38   :  { %682 = vmatpush1.bf16.msra.mxu0 %v1664_v50  ;;  %649 = vmatpush1.bf16.msra.mxu1 %v1691_v3  ;;  %v1730_v50 = vld [vmem:[#allocation3 + $0x1e8] ss:$16 sps:$4 sm:$0xff]  }
  0x39   :  { %683 = vmatprep.subr.bf16.mxu0 %v1672_v53  ;;  %650 = vmatprep.subr.bf16.mxu1 %v1692_v4  ;;  %v1743_v3 = vld [vmem:[#allocation3 + $0x228] ss:$16 sps:$4 sm:$0xff]   ;;  %v1748_v4 = vld [vmem:[#allocation3 + $0x244] ss:$16 sps:$4 sm:$0xff]  }
  0x3c   :  { %684 = vmatpush1.bf16.msra.mxu0 %v1670_v54  ;;  %651 = vmatpush1.bf16.msra.mxu1 %v1697_v7  ;;  %v1749_v7 = vld [vmem:[#allocation3 + $0x248] ss:$16 sps:$4 sm:$0xff]  }
  0x3d   :  { %685 = vmatprep.subr.bf16.mxu0 %v1678_v57  ;;  %652 = vmatprep.subr.bf16.mxu1 %v1698_v8  ;;  %v1754_v8 = vld [vmem:[#allocation3 + $0x264] ss:$16 sps:$4 sm:$0xff]  }
  0x40   :  { %686 = vmatpush1.bf16.msra.mxu0 %v1676_v58  ;;  %653 = vmatpush1.bf16.msra.mxu1 %v1703_v11  ;;  %v1755_v11 = vld [vmem:[#allocation3 + $0x268] ss:$16 sps:$4 sm:$0xff]  }
  0x41   :  { %687 = vmatprep.subr.bf16.mxu0 %v1684_v61  ;;  %654 = vmatprep.subr.bf16.mxu1 %v1704_v12  ;;  %v1734_v61 = vld [vmem:[#allocation3 + $0x200] ss:$16 sps:$4 sm:$0xff]   ;;  %v1760_v12 = vld [vmem:[#allocation3 + $0x284] ss:$16 sps:$4 sm:$0xff]  }
  0x44   :  { %688 = vmatpush1.bf16.msra.mxu0 %v1682_v62  ;;  %655 = vmatpush1.bf16.msra.mxu1 %v1709_v15  ;;  %v1737_v62 = vld [vmem:[#allocation3 + $0x208] ss:$16 sps:$4 sm:$0xff]  }
  0x45   :  { %689 = vmatprep.subr.bf16.mxu0 %v1690_v1  ;;  %656 = vmatprep.subr.bf16.mxu1 %v1710_v16  ;;  %v1745_v1 = vld [vmem:[#allocation3 + $0x22c] ss:$16 sps:$4 sm:$0xff]   ;;  %v1761_v15 = vld [vmem:[#allocation3 + $0x288] ss:$16 sps:$4 sm:$0xff]   ;;  %v1766_v16 = vld [vmem:[#allocation3 + $0x2a4] ss:$16 sps:$4 sm:$0xff]  }
  0x48   :  { %690 = vmatpush1.bf16.msra.mxu0 %v1688_v2  ;;  %v1740_v2 = vld [vmem:[#allocation3 + $0x220] ss:$16 sps:$4 sm:$0xff]  }
  0x49   :  { %691 = vmatprep.subr.bf16.mxu0 %v1696_v5  ;;  %v1751_v5 = vld [vmem:[#allocation3 + $0x24c] ss:$16 sps:$4 sm:$0xff]  }
  0x4c   :  { %692 = vmatpush1.bf16.msra.mxu0 %v1694_v6  ;;  %v1746_v6 = vld [vmem:[#allocation3 + $0x240] ss:$16 sps:$4 sm:$0xff]  }
  0x4d   :  { %693 = vmatprep.subr.bf16.mxu0 %v1702_v9  ;;  %v1757_v9 = vld [vmem:[#allocation3 + $0x26c] ss:$16 sps:$4 sm:$0xff]  }
  0x50   :  { %694 = vmatpush1.bf16.msra.mxu0 %v1700_v10  ;;  %v1752_v10 = vld [vmem:[#allocation3 + $0x260] ss:$16 sps:$4 sm:$0xff]  }
  0x51   :  { %695 = vmatprep.subr.bf16.mxu0 %v1708_v13  ;;  %v1763_v13 = vld [vmem:[#allocation3 + $0x28c] ss:$16 sps:$4 sm:$0xff]  }
  0x54   :  { %696 = vmatpush1.bf16.msra.mxu0 %v1706_v14  ;;  %v1758_v14 = vld [vmem:[#allocation3 + $0x280] ss:$16 sps:$4 sm:$0xff]  }
  0x55   :  { %697 = vmatprep.subr.bf16.mxu0 %v1714_v17  ;;  %v1769_v17 = vld [vmem:[#allocation3 + $0x2ac] ss:$16 sps:$4 sm:$0xff]  }
  0x58   :  { %698 = vmatpush1.bf16.msra.mxu0 %v1712_v18  ;;  %v1764_v18 = vld [vmem:[#allocation3 + $0x2a0] ss:$16 sps:$4 sm:$0xff]  }
  0x59   :  { %699 = vmatprep.subr.bf16.mxu0 %v1720_v36  ;;  %v1788_v36 = vld [vmem:[#allocation3 + $0x320] ss:$16 sps:$4 sm:$0xff]  }
  0x5c   :  { %700 = vmatpush1.bf16.msra.mxu0 %v1718_v37  ;;  %v1791_v37 = vld [vmem:[#allocation3 + $0x328] ss:$16 sps:$4 sm:$0xff]  }
  0x5d   :  { %701 = vmatprep.subr.bf16.mxu0 %v1726_v41  ;;  %v1802_v41 = vld [vmem:[#allocation3 + $0x364] ss:$16 sps:$4 sm:$0xff]  }
  0x60   :  { %702 = vmatpush1.bf16.msra.mxu0 %v1724_v42  ;;  %v1805_v42 = vld [vmem:[#allocation3 + $0x36c] ss:$16 sps:$4 sm:$0xff]  }
  0x61   :  { %703 = vmatprep.subr.bf16.mxu0 %v1732_v47  ;;  %v1811_v47 = vld [vmem:[#allocation3 + $0x38c] ss:$16 sps:$4 sm:$0xff]  }
  0x64   :  { %704 = vmatpush1.bf16.msra.mxu0 %v1730_v50  ;;  %v1809_v50 = vld [vmem:[#allocation3 + $0x388] ss:$16 sps:$4 sm:$0xff]  }
  0x65   :  { %1211 = vmatprep.subr.bf16.mxu0 %v1739_v56  ;;  %v1815_v56 = vld [vmem:[#allocation3 + $0x3a8] ss:$16 sps:$4 sm:$0xff]  }
  0xfa   :  { %v133_v20 = vpop.f32.mrb[0].mxu0 }
  0xfb   :  { %v134_v21 = vadd.f32 %v133_v20, %v62_v19  ;;  %v1623_v22 = vpop.f32.mrb[1].mxu0  ;;  %v1715_v19 = vld [vmem:[#allocation3 + $0x180] ss:$16 sps:$4 sm:$0xff]  }
  0xfc   :  { %v136_v23 = vpop.f32.mrb[2].mxu0  ;;  %657 = vmatpush1.bf16.msra.mxu1 %v1715_v19  ;;  %v1767_v19 = vld [vmem:[#allocation3 + $0x2a8] ss:$16 sps:$4 sm:$0xff]  }
  0xfd   :  { %v139_v24 = vmax.f32 %v134_v21, 0.0  ;;  %v1624_v25 = vpop.f32.mrb[3].mxu0  ;;  %v166_v23 = vlaneseq  ;;  %658 = vmatprep.subr.bf16.mxu1 %v1716_v35  ;;  %v1793_v35 = vld [vmem:[#allocation3 + $0x32c] ss:$16 sps:$4 sm:$0xff]  }
  0xfe   :  { %v155_v25 = vld [vmem:[%s2119_s3 + $0x1] ss:$0 sm:$0xff] }
  0xff   :  { %v141_v26 = vsel %vm140_vm3, %v139_v24, 0.0  ;;  %v2004_v34 = vshrl.u32 %v166_v23, 7  ;;  %v1773_v23 = vld [vmem:[#allocation3 + $0x2c8] ss:$16 sps:$4 sm:$0xff]  }
 0x100   :  { %142 = vadd.xlane.f32.xlu0 %v141_v26  ;;  %659 = vmatpush1.bf16.msra.mxu1 %v1721_v38  ;;  %v1796_v38 = vld [vmem:[#allocation3 + $0x344] ss:$16 sps:$4 sm:$0xff]  }
 0x101   :  { %v2007_v45 = vsub.s32 0, %v2004_v34  ;;  %660 = vmatprep.subr.bf16.mxu1 %v1722_v39  ;;  %v1799_v39 = vld [vmem:[#allocation3 + $0x34c] ss:$16 sps:$4 sm:$0xff]  }
 0x104   :  { %661 = vmatpush1.bf16.msra.mxu1 %v1727_v43  ;;  %v1800_v43 = vld [vmem:[#allocation3 + $0x360] ss:$16 sps:$4 sm:$0xff]  }
 0x105   :  { %662 = vmatprep.subr.bf16.mxu1 %v1728_v46  ;;  %v1808_v46 = vld [vmem:[#allocation3 + $0x384] ss:$16 sps:$4 sm:$0xff]  }
 0x108   :  { %663 = vmatpush1.bf16.msra.mxu1 %v1733_v51  ;;  %v1448_v51 = vld [vmem:[%s2118_s2 + $0x2] sm:$0x3] }
 0x109   :  { %1170 = vmatprep.subr.bf16.mxu1 %v1736_v55  ;;  %v1812_v55 = vld [vmem:[#allocation3 + $0x3a0] ss:$16 sps:$4 sm:$0xff]  }
 0x18d   :  { %v143_v27 = vpop.xlane.xlu0 %142 }
 0x18e   :  { %v145_v28 = vmul.f32 0.015625, %v143_v27  ;;  %v1909_v27 = vmov 1966171168  }
 0x190   :  { %v1990_v29 = vsub.f32 %v139_v24, %v145_v28  ;;  %v172_v28 = vunpack.c.l.s4 %v1909_v27  ;;  %v1779_v27 = vld [vmem:[#allocation3 + $0x2e8] ss:$16 sps:$4 sm:$0xff]  }
 0x192   :  { %v147_v30 = vmul.f32 %v1990_v29, %v1990_v29  ;;  %v173_v40 = vunpack.c.0.s8 %v172_v28  ;;  %v1784_v28 = vld [vmem:[#allocation3 + $0x304] ss:$16 sps:$4 sm:$0xff]  }
 0x194   :  { %v148_v31 = vsel %vm140_vm3, %v147_v30, 0.0  ;;  %v190_v30 = vld [vmem:[%s2118_s2] sm:$0x3]  ;;  %v2010_v49 = vsub.s32 %v173_v40, %v2004_v34  ;;  %v1797_v40 = vld [vmem:[#allocation3 + $0x348] ss:$16 sps:$4 sm:$0xff]  }
 0x195   :  { %149 = vadd.xlane.f32.xlu0 %v148_v31  ;;  %v157_v31 = vld [vmem:[%s2119_s3 + $0x2] ss:$0 sm:$0xff]  ;;  %v191_v32 = vpack.c.bf16 %v190_v30, %v190_v30 }
 0x196   :  { %v1787_v30 = vld [vmem:[#allocation3 + $0x30c] ss:$16 sps:$4 sm:$0xff]  }
 0x197   :  { %192 = vst [vmem:[#allocation2 + $0x1] sm:$0x1] %v191_v32  ;;  %v1785_v32 = vld [vmem:[#allocation3 + $0x308] ss:$16 sps:$4 sm:$0xff]  }
 0x222   :  { %v150_v20 = vpop.xlane.xlu0 %149 }
 0x223   :  { %v151_v21 = vmul.f32 0.015625, %v150_v20  ;;  %v1772_v20 = vld [vmem:[#allocation3 + $0x2c4] ss:$16 sps:$4 sm:$0xff]  }
 0x225   :  { %v152_v22 = vadd.f32 1e-05, %v151_v21  ;;  %v1775_v21 = vld [vmem:[#allocation3 + $0x2cc] ss:$16 sps:$4 sm:$0xff]  }
 0x227   :  { %1854 = vrsqrt.f32 %v152_v22  ;;  %v1770_v22 = vld [vmem:[#allocation3 + $0x2c0] ss:$16 sps:$4 sm:$0xff]  }
 0x231   :  { %v1855_v24 = vpop.eup %1854 }
 0x232   :  { %v154_v26 = vmul.f32 %v1855_v24, %v1990_v29  ;;  %v1778_v24 = vld [vmem:[#allocation3 + $0x2e4] ss:$16 sps:$4 sm:$0xff]  }
 0x234   :  { %v156_v33 = vmul.f32 %v155_v25, %v154_v26  ;;  %v1781_v25 = vld [vmem:[#allocation3 + $0x2ec] ss:$16 sps:$4 sm:$0xff]   ;;  %v1776_v26 = vld [vmem:[#allocation3 + $0x2e0] ss:$16 sps:$4 sm:$0xff]  }
 0x236   :  { %v158_v29 = vadd.f32 %v157_v31, %v156_v33  ;;  %v1782_v31 = vld [vmem:[#allocation3 + $0x300] ss:$16 sps:$4 sm:$0xff]   ;;  %v1790_v33 = vld [vmem:[#allocation3 + $0x324] ss:$16 sps:$4 sm:$0xff]  }
 0x238   :  { %v162_v44 = vpack.c.bf16 %v158_v29, %v158_v29  ;;  %v1794_v29 = vld [vmem:[#allocation3 + $0x340] ss:$16 sps:$4 sm:$0xff]  }
 0x23a   :  { %v164_v48 = vpack.i.b16 %v162_v44, %v162_v44  ;;  %v1803_v44 = vld [vmem:[#allocation3 + $0x368] ss:$16 sps:$4 sm:$0xff]  }
 0x23c   :  { %v169_v52 = vrot.slane %v164_v48, %v2007_v45  ;;  %v1806_v48 = vld [vmem:[#allocation3 + $0x380] ss:$16 sps:$4 sm:$0xff]  }
 0x23e   :  { %v177_v53 = vrot.slane %v169_v52, %v2010_v49  ;;  %v195_v52 = vpack.c.bf16 %v1448_v51, %v1448_v51  ;;  %v1839_v51 = vld [vmem:[%s2120_s4 + $0x48] ss:$12 sps:$4 sm:$0xff]  }
 0x240   :  { %v184_v54 = vrot.slane %v177_v53, %v2010_v49  ;;  %v1814_v53 = vld [vmem:[#allocation3 + $0x3a4] ss:$16 sps:$4 sm:$0xff]   ;;  %197 = vst [vmem:[#allocation2 + $0x3] sm:$0x1] %v195_v52  ;;  %v1844_v52 = vld [vmem:[%s2120_s4 + $0x64] ss:$12 sps:$4 sm:$0xff]  }
 0x242   :  { %185 = vrot.lane.b32.xlu1 %v184_v54, %s1910_s11  ;;  %v1817_v54 = vld [vmem:[#allocation3 + $0x3ac] ss:$16 sps:$4 sm:$0xff]  }
 0x2b4   :  { %v186_v57 = vpop.permute.xlu1 %185 }
 0x2b5   :  { %189 = vst.msk [vmem:[#allocation2] sm:$0x1] %vm188_vm4, %v186_v57  ;;  %v1820_v57 = vld [vmem:[#allocation3 + $0x3c4] ss:$16 sps:$4 sm:$0xff]  }
 0x2bc   :  { %v1450_v58 = vld.sshfl [vmem:[#allocation2] sm:$0x11 pattern:$0x75316420] }
 0x2bd   :  { %v295_v59 = vcombine.high %v1450_v58, %v1450_v58  ;;  %v302_v63 = vrot.slane %v1450_v58, %v2010_v49  ;;  %v1823_v58 = vld [vmem:[#allocation3 + $0x3cc] ss:$16 sps:$4 sm:$0xff]  }
 0x2bf   :  { %v309_v60 = vrot.slane %v295_v59, %v2010_v49  ;;  %v1818_v59 = vld [vmem:[#allocation3 + $0x3c0] ss:$16 sps:$4 sm:$0xff]  }
 0x2c1   :  { %664 = vmatprep.mubr.bf16.mxu1 %v309_v60  ;;  %705 = vmatprep.mubr.bf16.mxu0 %v309_v60  ;;  %v1821_v60 = vld [vmem:[#allocation3 + $0x3c8] ss:$16 sps:$4 sm:$0xff]  }
 0x2c2   :  { %665 = vmatmul.mubr.bf16.vlgmr.msra.gmra.mrb[0].mxu1 %v302_v63  ;;  %706 = vmatmul.mubr.bf16.vlgmr.msra.gmra.mrb[4].mxu0 %v302_v63  ;;  %v1824_v63 = vld [vmem:[#allocation3 + $0x3e0] ss:$16 sps:$4 sm:$0xff]  }
 0x2c3   :  { %1171 = vmatpush1.bf16.msra.mxu1 %v1734_v61  ;;  %1212 = vmatpush1.bf16.msra.mxu0 %v1737_v62  ;;  %v1826_v61 = vld [vmem:[#allocation3 + $0x3e4] ss:$16 sps:$4 sm:$0xff]   ;;  %v1829_v62 = vld [vmem:[#allocation3 + $0x3ec] ss:$16 sps:$4 sm:$0xff]  }
 0x2c4   :  { %1172 = vmatprep.subr.bf16.mxu1 %v1742_v0  ;;  %1213 = vmatprep.subr.bf16.mxu0 %v1745_v1  ;;  %v1827_v0 = vld [vmem:[#allocation3 + $0x3e8] ss:$16 sps:$4 sm:$0xff]   ;;  %v1449_v1 = vld [vmem:[%s2119_s3 + $0x3] ss:$8 sm:$0xf] }
 0x2c7   :  { %1173 = vmatpush1.bf16.msra.mxu1 %v1740_v2  ;;  %1214 = vmatpush1.bf16.msra.mxu0 %v1743_v3  ;;  %v2024_v2 = vsub.s32 1, %v2004_v34  ;;  %v270_v3 = vrot.slane %v1449_v1, %v2007_v45 }
 0x2c8   :  { %1174 = vmatprep.subr.bf16.mxu1 %v1748_v4  ;;  %1215 = vmatprep.subr.bf16.mxu0 %v1751_v5 }
 0x2cb   :  { %1175 = vmatpush1.bf16.msra.mxu1 %v1746_v6  ;;  %1216 = vmatpush1.bf16.msra.mxu0 %v1749_v7  ;;  %v274_v6 = vrot.slane %v1449_v1, %v2024_v2 }
 0x2cc   :  { %1176 = vmatprep.subr.bf16.mxu1 %v1754_v8  ;;  %1217 = vmatprep.subr.bf16.mxu0 %v1757_v9 }
 0x2cf   :  { %1177 = vmatpush1.bf16.msra.mxu1 %v1752_v10  ;;  %1218 = vmatpush1.bf16.msra.mxu0 %v1755_v11 }
 0x2d0   :  { %1178 = vmatprep.subr.bf16.mxu1 %v1760_v12  ;;  %1219 = vmatprep.subr.bf16.mxu0 %v1763_v13 }
 0x2d3   :  { %1179 = vmatpush1.bf16.msra.mxu1 %v1758_v14  ;;  %1220 = vmatpush1.bf16.msra.mxu0 %v1761_v15 }
 0x2d4   :  { %1180 = vmatprep.subr.bf16.mxu1 %v1766_v16  ;;  %1221 = vmatprep.subr.bf16.mxu0 %v1769_v17 }
 0x2d7   :  { %1181 = vmatpush1.bf16.msra.mxu1 %v1764_v18  ;;  %1222 = vmatpush1.bf16.msra.mxu0 %v1767_v19  ;;  %v281_v19 = vsub.s32 3, %v2004_v34 }
 0x2d8   :  { %1182 = vmatprep.subr.bf16.mxu1 %v1772_v20  ;;  %1223 = vmatprep.subr.bf16.mxu0 %v1775_v21  ;;  %v277_v20 = vsub.s32 2, %v2004_v34 }
 0x2db   :  { %1183 = vmatpush1.bf16.msra.mxu1 %v1770_v22  ;;  %1224 = vmatpush1.bf16.msra.mxu0 %v1773_v23  ;;  %v282_v22 = vrot.slane %v1449_v1, %v281_v19  ;;  %v278_v23 = vrot.slane %v1449_v1, %v277_v20 }
 0x2dc   :  { %1184 = vmatprep.subr.bf16.mxu1 %v1778_v24  ;;  %1225 = vmatprep.subr.bf16.mxu0 %v1781_v25 }
 0x2df   :  { %1185 = vmatpush1.bf16.msra.mxu1 %v1776_v26  ;;  %1226 = vmatpush1.bf16.msra.mxu0 %v1779_v27 }
 0x2e0   :  { %1186 = vmatprep.subr.bf16.mxu1 %v1784_v28  ;;  %1227 = vmatprep.subr.bf16.mxu0 %v1787_v30 }
 0x2e3   :  { %1187 = vmatpush1.bf16.msra.mxu1 %v1782_v31  ;;  %1228 = vmatpush1.bf16.msra.mxu0 %v1785_v32  ;;  %v199_v32 = vld [vmem:[%s2118_s2] sm:$0x3] }
 0x2e4   :  { %1188 = vmatprep.subr.bf16.mxu1 %v1790_v33  ;;  %1229 = vmatprep.subr.bf16.mxu0 %v1793_v35 }
 0x2e7   :  { %1189 = vmatpush1.bf16.msra.mxu1 %v1788_v36  ;;  %1230 = vmatpush1.bf16.msra.mxu0 %v1791_v37 }
 0x2e8   :  { %1190 = vmatprep.subr.bf16.mxu1 %v1796_v38  ;;  %1231 = vmatprep.subr.bf16.mxu0 %v1799_v39 }
 0x2eb   :  { %1191 = vmatpush1.bf16.msra.mxu1 %v1794_v29  ;;  %1232 = vmatpush1.bf16.msra.mxu0 %v1797_v40 }
 0x2ec   :  { %1192 = vmatprep.subr.bf16.mxu1 %v1802_v41  ;;  %1233 = vmatprep.subr.bf16.mxu0 %v1805_v42 }
 0x2ef   :  { %1193 = vmatpush1.bf16.msra.mxu1 %v1800_v43  ;;  %1234 = vmatpush1.bf16.msra.mxu0 %v1803_v44  ;;  %v1832_v43 = vld [vmem:[%s2120_s4 + $0x4] ss:$12 sps:$4 sm:$0xff]   ;;  %v1830_v44 = vld [vmem:[%s2120_s4] ss:$12 sps:$4 sm:$0xff]  }
 0x2f0   :  { %1194 = vmatprep.subr.bf16.mxu1 %v1808_v46  ;;  %1235 = vmatprep.subr.bf16.mxu0 %v1811_v47  ;;  %v1835_v46 = vld [vmem:[%s2120_s4 + $0x1c] ss:$12 sps:$4 sm:$0xff]   ;;  %v1838_v47 = vld [vmem:[%s2120_s4 + $0x34] ss:$12 sps:$4 sm:$0xff]  }
 0x2f3   :  { %1195 = vmatpush1.bf16.msra.mxu1 %v1806_v48  ;;  %1236 = vmatpush1.bf16.msra.mxu0 %v1809_v50  ;;  %v1836_v48 = vld [vmem:[%s2120_s4 + $0x30] ss:$12 sps:$4 sm:$0xff]   ;;  %v1841_v50 = vld [vmem:[%s2120_s4 + $0x4c] ss:$12 sps:$4 sm:$0xff]  }
 0x2f4   :  { %1196 = vmatprep.subr.bf16.mxu1 %v1814_v53  ;;  %1237 = vmatprep.subr.bf16.mxu0 %v1817_v54  ;;  %v1842_v53 = vld [vmem:[%s2120_s4 + $0x60] ss:$12 sps:$4 sm:$0xff]   ;;  %v1847_v54 = vld [vmem:[%s2120_s4 + $0x7c] ss:$12 sps:$4 sm:$0xff]  }
 0x2f7   :  { %1197 = vmatpush1.bf16.msra.mxu1 %v1812_v55  ;;  %1238 = vmatpush1.bf16.msra.mxu0 %v1815_v56  ;;  %v1845_v55 = vld [vmem:[%s2120_s4 + $0x78] ss:$12 sps:$4 sm:$0xff]   ;;  %v1850_v56 = vld [vmem:[%s2120_s4 + $0x94] ss:$12 sps:$4 sm:$0xff]  }
 0x2f8   :  { %1198 = vmatprep.subr.bf16.mxu1 %v1820_v57  ;;  %1239 = vmatprep.subr.bf16.mxu0 %v1823_v58  ;;  %v1911_v57 = vmov 0   ;;  %v1848_v58 = vld [vmem:[%s2120_s4 + $0x90] ss:$12 sps:$4 sm:$0xff]  }
 0x2fb   :  { %1199 = vmatpush1.bf16.msra.mxu1 %v1818_v59  ;;  %1240 = vmatpush1.bf16.msra.mxu0 %v1821_v60  ;;  %v1853_v59 = vld [vmem:[%s2120_s4 + $0xac] ss:$12 sps:$4 sm:$0xff]   ;;  %v1851_v60 = vld [vmem:[%s2120_s4 + $0xa8] ss:$12 sps:$4 sm:$0xff]  }
 0x2fc   :  { %1200 = vmatprep.subr.bf16.mxu1 %v1826_v61  ;;  %1241 = vmatprep.subr.bf16.mxu0 %v1829_v62  ;;  %v1518_v61 = vld [vmem:[%s2119_s3 + $0x4] ss:$8 sm:$0xf] }
 0x2fd   :  { %v808_v62 = vrot.slane %v1518_v61, %v2007_v45  ;;  %v812_v1 = vrot.slane %v1518_v61, %v2024_v2 }
 0x2ff   :  { %1201 = vmatpush1.bf16.msra.mxu1 %v1824_v63  ;;  %1242 = vmatpush1.bf16.msra.mxu0 %v1827_v0 }
 0x300   :  { %1384 = vmatprep.subr.bf16.mxu1 %v1832_v43 }
 0x395   :  { %v666_v4 = vpop.f32.mrb[0].mxu1  ;;  %v707_v5 = vpop.f32.mrb[4].mxu0 }
 0x396   :  { %v667_v7 = vadd.f32 %v666_v4, %v270_v3  ;;  %v668_v8 = vpop.f32.mrb[1].mxu1  ;;  %v709_v9 = vpop.f32.mrb[5].mxu0  ;;  %v708_v27 = vadd.f32 %v707_v5, %v278_v23 }
 0x397   :  { %v670_v10 = vpop.f32.mrb[2].mxu1  ;;  %v711_v11 = vpop.f32.mrb[6].mxu0  ;;  %v669_v15 = vadd.f32 %v668_v8, %v274_v6  ;;  %v710_v25 = vadd.f32 %v709_v9, %v282_v22 }
 0x398   :  { %v1515_v12 = vmul.f32 -1.442695, %v667_v7  ;;  %v671_v13 = vpop.f32.mrb[3].mxu1  ;;  %v712_v14 = vpop.f32.mrb[7].mxu0 }
 0x399   :  { %v1516_v16 = vmul.f32 -1.442695, %v669_v15 }
 0x39a   :  { %1856 = vpow2.f32 %v1515_v12 }
 0x39b   :  { %1858 = vpow2.f32 %v1516_v16  ;;  %v820_v16 = vrot.slane %v1518_v61, %v281_v19 }
 0x3a4   :  { %v1857_v17 = vpop.eup %1856 }
 0x3a5   :  { %v720_v18 = vadd.f32 1.0, %v1857_v17  ;;  %v1859_v21 = vpop.eup %1858  ;;  %v816_v17 = vrot.slane %v1518_v61, %v277_v20  ;;  %v1587_v20 = vld [vmem:[%s2119_s3 + $0x5] ss:$8 sm:$0x3] }
 0x3a6   :  { %v721_v24 = vadd.f32 1.0, %v1859_v21 }
 0x3a7   :  { %1860 = vrcp.f32 %v720_v18 }
 0x3a8   :  { %1862 = vrcp.f32 %v721_v24 }
 0x3b1   :  { %v1861_v26 = vpop.eup %1860 }
 0x3b2   :  { %v726_v28 = vmul.f32 %v1861_v26, %v710_v25  ;;  %v1863_v31 = vpop.eup %1862 }
 0x3b3   :  { %v729_v33 = vsub.f32 1.0, %v1863_v31  ;;  %v731_v36 = vmul.f32 %v1863_v31, %v199_v32 }
 0x3b4   :  { %v727_v30 = vadd.f32 %v726_v28, %v708_v27 }
 0x3b6   :  { %1864 = vtanh.f32 %v727_v30 }
 0x3c0   :  { %v1865_v35 = vpop.eup %1864 }
 0x3c1   :  { %v730_v37 = vmul.f32 %v1865_v35, %v729_v33  ;;  %v1297_v33 = vrot.slane %v1587_v20, %v2007_v45  ;;  %v1301_v35 = vrot.slane %v1587_v20, %v2024_v2 }
 0x3c3   :  { %v732_v38 = vadd.f32 %v731_v36, %v730_v37 }
 0x3c5   :  { %v733_v39 = vpack.c.bf16 %v732_v38, %v732_v38  ;;  %1271 = vst [vmem:[%s2123_s7] sm:$0x3] %v732_v38 }
 0x3c7   :  { %734 = vst [vmem:[#allocation2 + $0x2] sm:$0x1] %v733_v39 }
 0x3cc   :  { %v1517_v27 = vld [vmem:[%s2118_s2 + $0x2] sm:$0x3] }
 0x3ce   :  { %v1519_v29 = vld.sshfl [vmem:[#allocation2 + $0x2] sm:$0x11 pattern:$0x75316420] }
 0x3cf   :  { %v833_v40 = vcombine.high %v1519_v29, %v1519_v29  ;;  %v840_v42 = vrot.slane %v1519_v29, %v2010_v49 }
 0x3d1   :  { %v847_v41 = vrot.slane %v833_v40, %v2010_v49  ;;  %v1833_v49 = vld [vmem:[%s2120_s4 + $0x18] ss:$12 sps:$4 sm:$0xff]  }
 0x3d3   :  { %1202 = vmatprep.mubr.bf16.mxu1 %v847_v41  ;;  %1243 = vmatprep.mubr.bf16.mxu0 %v847_v41 }
 0x3d4   :  { %1203 = vmatmul.mubr.bf16.vlgmr.msra.gmra.mrb[4].mxu1 %v840_v42  ;;  %1244 = vmatmul.mubr.bf16.vlgmr.msra.gmra.mrb[8].mxu0 %v840_v42 }
 0x3d5   :  { %1385 = vmatpush1.bf16.msra.mxu1 %v1830_v44  ;;  %1416 = vmatprep.mubr.bf16.mxu1 %v1911_v57 }
 0x3d6   :  { %1386 = vmatprep.subr.bf16.mxu1 %v1835_v46 }
 0x3d9   :  { %1387 = vmatpush1.bf16.msra.mxu1 %v1833_v49 }
 0x3da   :  { %1388 = vmatprep.subr.bf16.mxu1 %v1838_v47 }
 0x3dd   :  { %1389 = vmatpush1.bf16.msra.mxu1 %v1836_v48 }
 0x3de   :  { %1390 = vmatprep.subr.bf16.mxu1 %v1841_v50 }
 0x3e1   :  { %1391 = vmatpush1.bf16.msra.mxu1 %v1839_v51 }
 0x3e2   :  { %1392 = vmatprep.subr.bf16.mxu1 %v1844_v52 }
 0x3e5   :  { %1393 = vmatpush1.bf16.msra.mxu1 %v1842_v53 }
 0x3e6   :  { %1394 = vmatprep.subr.bf16.mxu1 %v1847_v54 }
 0x3e9   :  { %1395 = vmatpush1.bf16.msra.mxu1 %v1845_v55 }
 0x3ea   :  { %1396 = vmatprep.subr.bf16.mxu1 %v1850_v56 }
 0x3ed   :  { %1397 = vmatpush1.bf16.msra.mxu1 %v1848_v58 }
 0x3ee   :  { %1398 = vmatprep.subr.bf16.mxu1 %v1853_v59 }
 0x3f1   :  { %1399 = vmatpush1.bf16.msra.mxu1 %v1851_v60 }
 0x4a7   :  { %v1204_v63 = vpop.f32.mrb[4].mxu1  ;;  %v1245_v0 = vpop.f32.mrb[8].mxu0 }
 0x4a8   :  { %v1205_v3 = vadd.f32 %v1204_v63, %v808_v62  ;;  %v1206_v4 = vpop.f32.mrb[5].mxu1  ;;  %v1247_v5 = vpop.f32.mrb[9].mxu0  ;;  %v1246_v23 = vadd.f32 %v1245_v0, %v816_v17 }
 0x4a9   :  { %v1208_v6 = vpop.f32.mrb[6].mxu1  ;;  %v1249_v7 = vpop.f32.mrb[10].mxu0  ;;  %v1207_v11 = vadd.f32 %v1206_v4, %v812_v1  ;;  %v1248_v21 = vadd.f32 %v1247_v5, %v820_v16 }
 0x4aa   :  { %v1584_v8 = vmul.f32 -1.442695, %v1205_v3  ;;  %v1209_v9 = vpop.f32.mrb[7].mxu1  ;;  %v1250_v10 = vpop.f32.mrb[11].mxu0 }
 0x4ab   :  { %v1585_v12 = vmul.f32 -1.442695, %v1207_v11 }
 0x4ac   :  { %1866 = vpow2.f32 %v1584_v8 }
 0x4ad   :  { %1868 = vpow2.f32 %v1585_v12 }
 0x4b6   :  { %v1867_v13 = vpop.eup %1866 }
 0x4b7   :  { %v1258_v14 = vadd.f32 1.0, %v1867_v13  ;;  %v1869_v15 = vpop.eup %1868 }
 0x4b8   :  { %v1259_v18 = vadd.f32 1.0, %v1869_v15 }
 0x4b9   :  { %1870 = vrcp.f32 %v1258_v14 }
 0x4ba   :  { %1872 = vrcp.f32 %v1259_v18 }
 0x4c3   :  { %v1871_v22 = vpop.eup %1870 }
 0x4c4   :  { %v1264_v24 = vmul.f32 %v1871_v22, %v1248_v21  ;;  %v1873_v26 = vpop.eup %1872 }
 0x4c5   :  { %v1267_v28 = vsub.f32 1.0, %v1873_v26  ;;  %v1269_v19 = vmul.f32 %v1873_v26, %v1517_v27 }
 0x4c6   :  { %v1265_v25 = vadd.f32 %v1264_v24, %v1246_v23 }
 0x4c8   :  { %1874 = vtanh.f32 %v1265_v25 }
 0x4d2   :  { %v1875_v30 = vpop.eup %1874 }
 0x4d3   :  { %v1268_v31 = vmul.f32 %v1875_v30, %v1267_v28 }
 0x4d5   :  { %v1270_v32 = vadd.f32 %v1269_v19, %v1268_v31 }
 0x4d7   :  { %1586 = vst [vmem:[%s2123_s7 + $0x2] sm:$0x3] %v1270_v32  ;;  %v1274_v34 = vpack.c.bf16 %v1270_v32, %v1270_v32 }
 0x4d9   :  { %1417 = vmatmul.mubr.bf16.vlgmr.msra.gmra.mrb[8].mxu1 %v1274_v34 }
 0x5ac   :  { %v1418_v36 = vpop.f32.mrb[8].mxu1 }
 0x5ad   :  { %v1419_v37 = vadd.f32 %v1418_v36, %v1297_v33  ;;  %v1420_v38 = vpop.f32.mrb[9].mxu1 }
 0x5ae   :  { %v1421_v39 = vadd.f32 %v1420_v38, %v1301_v35  ;;  %v1422_v29 = vpop.f32.mrb[10].mxu1 }
 0x5af   :  { %1425 = vst [vmem:[%s2122_s6] sm:$0x3] %v1419_v37  ;;  %v1423_v40 = vpop.f32.mrb[11].mxu1 }
 0x5b0   :  { %v1604_v41 = vmul.f32 -1.442695, %v1421_v39 }
 0x5b2   :  { %1876 = vpow2.f32 %v1604_v41 }
 0x5bc   :  { %v1877_v42 = vpop.eup %1876 }
 0x5bd   :  { %v1429_v43 = vadd.f32 1.0, %v1877_v42 }
 0x5bf   :  { %1878 = vrcp.f32 %v1429_v43 }
 0x5c9   :  { %v1879_v44 = vpop.eup %1878 }
 0x5ca   :  { %1432 = vst [vmem:[%s2122_s6 + $0x2] sm:$0x3] %v1879_v44 }
 0x5cb   :  { %1441 = vsyncpa [#allocation4], 1 }

</bundles_post_ra>
